<compile_context>
chip_gen: v5e
topology: v5e:2x2
jax: 0.10.0
libtpu: 0.0.40
codegen_flags: <defaults>
</compile_context>

<pallas_src>
import functools

import jax
import jax.numpy as jnp
from jax.experimental import pallas as pl
from jax.experimental.pallas import tpu as pltpu


def _make_kernel(C_out, C_pad, chunk, m, out_dtype):
    def kernel(w_ref, p_ref, x_ref, y_ref, o_ref):
        w = w_ref[...]                     # (C_pad, C_tot)
        p = p_ref[...]                     # (chunk, rate*chunk), 0/1 expansion
        x = x_ref[0]                       # (C_tot, tile_l)

        # 1x1 conv on the UN-upsampled length (commutes with nearest upsample).
        z = jnp.dot(w, x, preferred_element_type=jnp.float32)   # (C_pad, tile_l)

        if m == 1:
            # Single chunk: expand directly (C_pad == C_out here).
            z_up = jnp.dot(z, p, preferred_element_type=jnp.float32)
        else:
            # Stack the lane-chunks on sublanes (8-aligned because C_pad % 8 == 0)
            # so a SINGLE matmul (P pushed to the MXU once) expands every chunk,
            # then re-lay the chunks out along lanes with static concatenates.
            stacked = jnp.concatenate(
                [z[:, k * chunk:(k + 1) * chunk] for k in range(m)], axis=0
            )                                           # (C_pad*m, chunk)
            zz = jnp.dot(stacked, p, preferred_element_type=jnp.float32)
            z_up = jnp.concatenate(
                [zz[k * C_pad:k * C_pad + C_out, :] for k in range(m)], axis=1
            )                                           # (C_out, rate*tile_l)

        o_ref[0] = (z_up + y_ref[0].astype(jnp.float32)).astype(out_dtype)

    return kernel


def _pick_tile_l(L, C_tot, C_out, rate, itemsize,
                 vmem_block_budget=12 * 1024 * 1024):
    """Largest 128-multiple tile dividing L whose 2-deep pipelined block
    footprint (with sublane padding of the C_out rows) fits the budget.
    Budget sized conservatively for v7x (64 MiB physical / 32 MiB scoped)."""
    def pad8(c):
        return -(-c // 8) * 8

    def footprint(t):
        x_b = pad8(C_tot) * t * itemsize
        yo_b = pad8(C_out) * rate * t * itemsize
        return 2 * (x_b + 2 * yo_b)      # double-buffered x, y, out blocks

    if L % 128 != 0:
        return L                          # small / ragged: one full-length block
    t = 8192
    while t > 128 and (L % t != 0 or footprint(t) > vmem_block_budget):
        t //= 2
    return t


@functools.partial(jax.jit, static_argnames=("upsample_rate",))
def skip_upsample(x, y, weight, *, upsample_rate=2):
    """x: (N, C_tot, L), y: (N, C_out, L*rate), weight: (C_out, C_tot)."""
    N, C_tot, L = x.shape
    C_out = weight.shape[0]
    rate = upsample_rate
    L2 = L * rate
    assert y.shape == (N, C_out, L2)
    assert weight.shape == (C_out, C_tot)

    out_dtype = y.dtype
    itemsize = jnp.dtype(x.dtype).itemsize
    tile_l = _pick_tile_l(L, C_tot, C_out, rate, itemsize)
    n_tiles = L // tile_l
    chunk = 128 if tile_l % 128 == 0 else tile_l
    m = tile_l // chunk

    # Pad C_out up to a multiple of 8 when chunks are stacked on sublanes, so
    # every sublane slice/concat in the kernel is vreg-aligned.
    C_pad = C_out if (m == 1 or C_out % 8 == 0) else (-(-C_out // 8) * 8)
    if C_pad != C_out:
        w_in = jnp.zeros((C_pad, C_tot), weight.dtype).at[:C_out, :].set(weight)
    else:
        w_in = weight

    # 0/1 nearest-neighbor expansion matrix: P[l, rate*l + r] = 1.
    # Built once in the wrapper (plain XLA) and kept resident in VMEM.
    p_mat = jnp.repeat(jnp.eye(chunk, dtype=jnp.float32), rate, axis=1)

    kernel = _make_kernel(C_out, C_pad, chunk, m, out_dtype)

    cost = pl.CostEstimate(
        # 1x1 conv (on un-upsampled length) + MXU-based duplication.
        flops=2 * N * C_pad * C_tot * L + 2 * N * C_out * L2 * chunk,
        transcendentals=0,
        bytes_accessed=(x.size + y.size) * itemsize
        + N * C_out * L2 * jnp.dtype(out_dtype).itemsize
        + C_pad * C_tot * jnp.dtype(weight.dtype).itemsize
        + chunk * rate * chunk * 4,
    )

    return pl.pallas_call(
        kernel,
        out_shape=jax.ShapeDtypeStruct((N, C_out, L2), out_dtype),
        grid_spec=pltpu.PrefetchScalarGridSpec(
            num_scalar_prefetch=0,
            grid=(N, n_tiles),
            in_specs=[
                pl.BlockSpec((C_pad, C_tot), lambda n, j: (0, 0)),          # weight (resident)
                pl.BlockSpec((chunk, rate * chunk), lambda n, j: (0, 0)),   # expansion P (resident)
                pl.BlockSpec((1, C_tot, tile_l), lambda n, j: (n, 0, j)),   # x (not upsampled)
                pl.BlockSpec((1, C_out, rate * tile_l), lambda n, j: (n, 0, j)),  # y
            ],
            out_specs=pl.BlockSpec((1, C_out, rate * tile_l), lambda n, j: (n, 0, j)),
        ),
        compiler_params=pltpu.CompilerParams(
            # Both axes parallel: lets v7x's 2 TensorCores split the length axis
            # even when N is 1 or 2.
            dimension_semantics=("parallel", "parallel"),
            vmem_limit_bytes=32 * 1024 * 1024,
        ),
        cost_estimate=cost,
    )(w_in, p_mat, x, y)


def _reference(x, y, weight, rate):
    x_up = jnp.repeat(x, rate, axis=-1)
    return jnp.einsum("oc,ncl->nol", weight, x_up) + y


if __name__ == "__main__":
    N = 2
    in_channels = 4            # C_out of the 1x1 conv
    s_factor = 4
    C_tot = in_channels + s_factor
    rate = 2

    key = jax.random.PRNGKey(0)
    kx, ky, kw = jax.random.split(key, 3)
    weight = jax.random.normal(kw, (in_channels, C_tot), dtype=jnp.float32) * 0.1

    ok = True
    # Case 1: small, non-128-aligned length (single full-length block, m=1).
    # Case 2: 128-aligned length (m=2, padded-sublane stacking path).
    # Case 3: longer 128-aligned length (m=8, padded-sublane stacking path).
    for L in (16, 256, 1024):
        kx, kx_l = jax.random.split(kx)
        ky, ky_l = jax.random.split(ky)
        x = jax.random.normal(kx_l, (N, C_tot, L), dtype=jnp.float32)
        y = jax.random.normal(ky_l, (N, in_channels, L * rate), dtype=jnp.float32)

        out = skip_upsample(x, y, weight, upsample_rate=rate)
        out = jax.block_until_ready(out)
        ref = _reference(x, y, weight, rate)
        ok = ok and (out.shape == ref.shape)
        ok = ok and bool(jnp.allclose(out, ref, atol=1e-5, rtol=1e-5))

    assert ok
    print("KERNEL_OK")
</pallas_src>

<mosaic_0001>
module attributes {stable_mosaic.version = 11 : i64} {
  func.func @kernel(%arg0: i32, %arg1: i32, %arg2: memref<4x8xf32, #tpu.memory_space<vmem>>, %arg3: memref<16x32xf32, #tpu.memory_space<vmem>>, %arg4: memref<1x8x16xf32, #tpu.memory_space<vmem>>, %arg5: memref<1x4x32xf32, #tpu.memory_space<vmem>>, %arg6: memref<1x4x32xf32, #tpu.memory_space<vmem>>) attributes {dimension_semantics = [#tpu.dimension_semantics<parallel>, #tpu.dimension_semantics<parallel>], iteration_bounds = array<i64: 2, 1>, scalar_prefetch = 0 : i64, scratch_operands = 0 : i64, tpu.core_type = #tpu.core_type<tc>, window_params = [{pipeline_mode = #tpu.pipeline_mode<synchronous>, transform_indices = @transform_0, window_bounds = array<i64: 4, 8>}, {pipeline_mode = #tpu.pipeline_mode<synchronous>, transform_indices = @transform_1, window_bounds = array<i64: 16, 32>}, {transform_indices = @transform_2, window_bounds = array<i64: 1, 8, 16>}, {transform_indices = @transform_3, window_bounds = array<i64: 1, 4, 32>}, {transform_indices = @transform_4, window_bounds = array<i64: 1, 4, 32>}]} {
    %c0 = arith.constant 0 : index
    %c0_0 = arith.constant 0 : index
    %0 = vector.load %arg2[%c0, %c0_0] : memref<4x8xf32, #tpu.memory_space<vmem>>, vector<4x8xf32>
    %c0_1 = arith.constant 0 : index
    %c0_2 = arith.constant 0 : index
    %1 = vector.load %arg3[%c0_1, %c0_2] : memref<16x32xf32, #tpu.memory_space<vmem>>, vector<16x32xf32>
    %c0_3 = arith.constant 0 : index
    %c0_4 = arith.constant 0 : index
    %c0_5 = arith.constant 0 : index
    %2 = vector.load %arg4[%c0_3, %c0_4, %c0_5] : memref<1x8x16xf32, #tpu.memory_space<vmem>>, vector<1x8x16xf32>
    %3 = vector.shape_cast %2 : vector<1x8x16xf32> to vector<8x16xf32>
    %cst = arith.constant dense<0.000000e+00> : vector<4x16xf32>
    %4 = tpu.matmul %0, %3, %cst {dimension_numbers = #tpu.dot_dimension_numbers<[1], [0], [0], [1], [0, 0, 1, 1], [], []>} : vector<4x8xf32>, vector<8x16xf32>, vector<4x16xf32> -> vector<4x16xf32>
    %cst_6 = arith.constant dense<0.000000e+00> : vector<4x32xf32>
    %5 = tpu.matmul %4, %1, %cst_6 {dimension_numbers = #tpu.dot_dimension_numbers<[1], [0], [0], [1], [0, 0, 1, 1], [], []>} : vector<4x16xf32>, vector<16x32xf32>, vector<4x32xf32> -> vector<4x32xf32>
    %c0_7 = arith.constant 0 : index
    %c0_8 = arith.constant 0 : index
    %c0_9 = arith.constant 0 : index
    %6 = vector.load %arg5[%c0_7, %c0_8, %c0_9] : memref<1x4x32xf32, #tpu.memory_space<vmem>>, vector<1x4x32xf32>
    %7 = vector.shape_cast %6 : vector<1x4x32xf32> to vector<4x32xf32>
    %8 = arith.addf %5, %7 : vector<4x32xf32>
    %c0_10 = arith.constant 0 : index
    %c0_11 = arith.constant 0 : index
    %c0_12 = arith.constant 0 : index
    %9 = vector.load %arg6[%c0_10, %c0_11, %c0_12] : memref<1x4x32xf32, #tpu.memory_space<vmem>>, vector<1x4x32xf32>
    %10 = vector.shape_cast %9 : vector<1x4x32xf32> to vector<4x32xf32>
    %11 = vector.shape_cast %8 : vector<4x32xf32> to vector<1x4x32xf32>
    tpu.vector_store %arg6[%c0_10, %c0_11, %c0_12], %11 {strides = array<i32>} : memref<1x4x32xf32, #tpu.memory_space<vmem>>, vector<1x4x32xf32>,
    return
  }
  func.func @transform_0(%arg0: i32, %arg1: i32) -> (i32, i32) {
    %c0_i32 = arith.constant 0 : i32
    %c0_i32_0 = arith.constant 0 : i32
    %c0_i32_1 = arith.constant 0 : i32
    return %c0_i32, %c0_i32_0 : i32, i32
  }
  func.func @transform_1(%arg0: i32, %arg1: i32) -> (i32, i32) {
    %c0_i32 = arith.constant 0 : i32
    %c0_i32_0 = arith.constant 0 : i32
    %c0_i32_1 = arith.constant 0 : i32
    return %c0_i32, %c0_i32_0 : i32, i32
  }
  func.func @transform_2(%arg0: i32, %arg1: i32) -> (i32, i32, i32) {
    %c0_i32 = arith.constant 0 : i32
    %c0_i32_0 = arith.constant 0 : i32
    return %arg0, %c0_i32, %arg1 : i32, i32, i32
  }
  func.func @transform_3(%arg0: i32, %arg1: i32) -> (i32, i32, i32) {
    %c0_i32 = arith.constant 0 : i32
    %c0_i32_0 = arith.constant 0 : i32
    return %arg0, %c0_i32, %arg1 : i32, i32, i32
  }
  func.func @transform_4(%arg0: i32, %arg1: i32) -> (i32, i32, i32) {
    %c0_i32 = arith.constant 0 : i32
    %c0_i32_0 = arith.constant 0 : i32
    return %arg0, %c0_i32, %arg1 : i32, i32, i32
  }
}

</mosaic_0001>

<bundles_post_ra>
// kernel: skip_upsample.1
= control target key start
LH: loop header
LB: loop body
LE: loop exit
PB: predicated region body
PF: predicated region fallthrough
CT: control target
= control target key end

     0   :  { %9 = vsyncpa [#allocation3], 0  ;;  %s687_s0 = inlined_call_operand.vmem [shape: f32[4,8], index: 0, kind: input, shape index: {}]   ;;  %s688_s1 = inlined_call_operand.vmem [shape: f32[16,32], index: 1, kind: input, shape index: {}]   ;;  %s689_s2 = inlined_call_operand.vmem [shape: f32[2,8,16], index: 2, kind: input, shape index: {}]   ;;  %s690_s3 = inlined_call_operand.vmem [shape: f32[2,4,32], index: 3, kind: input, shape index: {}]   ;;  %s691_s4 = inlined_call_operand.hbm [shape: f32[2,4,32], index: 4, kind: output, shape index: {}]  }
   0x1   :  { %11 = vsyncpa [#allocation3 + $0x1], 0  ;;  %s578_s15 = smov 0   ;;  %s580_s16 = smov 0  }
   0x2   :  { %s582_s17 = smov 0   ;;  %s584_s18 = smov 0  }
   0x3   :  { %s586_s19 = smov 0   ;;  %s588_s20 = smov 0  }
   0x4 LB: > { %s404_s21 = sadd.s32 4294967295, %s551_s20   ;;  %s405_s22 = sadd.s32 4294967294, %s551_s20   ;;  %s551_s20 = sphi %s588_s20, %s17_s20   ;;  %s547_s19 = sphi %s586_s19, %s698_s19   ;;  %s543_s18 = sphi %s584_s18, %s697_s18   ;;  %s539_s17 = sphi %s582_s17, %s696_s17   ;;  %s535_s16 = sphi %s580_s16, %s695_s16   ;;  %s531_s15 = sphi %s578_s15, %s694_s15  }
   0x5   : > { %s29_s23 = sadd.s32 1, %s547_s19  ;;  %s136_s24 = sadd.s32 1, %s539_s17 }
   0x6   : > { %p31_p0 = scmp.ge.s32.totalorder %s29_s23, 2  ;;  %p146_p1 = scmp.ne.s32.totalorder %s539_s17, %s535_s16 }
   0x7   : > { %p147_p2 = scmp.eq.s32.totalorder %s404_s21, 1  ;;  %p152_p3 = scmp.ne.s32.totalorder %s535_s16, %s531_s15 }
   0x8   : > { %s700_s23 = smov (%p31_p0, %s29_s23), 0  ;;  %p153_p5 = scmp.eq.s32.totalorder %s405_s22, 1 }
   0x9   : > { %p618_p4 = por %p147_p2, %p146_p1  ;;  %s131_s26 = ssub.s32 %s547_s19, %s700_s23 }
   0xa   : > { %p408_p6 = scmp.ge.s32.totalorder %s551_s20, 1  ;;  %p134_p7 = scmp.eq.s32.totalorder %s131_s26, 0 }
   0xb   : > { %p625_p8 = por %p153_p5, %p152_p3  ;;  %p197_p9 = scmp.lt.s32.totalorder %s551_s20, 3 }
   0xc   : > { %s631_s28 = scalar_select %p134_p7, %s539_s17, %s136_s24  }
   0xd   : > { %p198_p10 = pnand %p408_p6, %p197_p9 }
   0xe   : > { %p232_p11 = scmp.lt.s32.totalorder (!%p198_p10), %s543_s18, 1  ;;  %s229_s14 = sand.u32 (!%p198_p10), 1, %s535_s16  }
   0xf   : > { %201 = sbr.rel (%p198_p10) target bundleno = 283 (0x11b), region = 36  ;;  %s409_s22 = sshll.u32 (!%p198_p10), %s229_s14, 2 }
  0x10   : > { %s415_s24 = sshll.u32 (!%p198_p10), %s543_s18, 2 }
  0x11   : > { %s313_s8 = scalar_lea.hbm (!%p198_p10), %s691_s4, %s415_s24 }
  0x12   : > { %s317_s11 = sshll.u32 (!%p198_p10), %s313_s8, 4  ;;  %s318_s11 = int_to_ptr.hbm [resolvable:$true] %s317_s11 }
  0x14   : > { %v248_v0 = vld [vmem:[%s688_s1 + $0x8] sm:$0xff]  ;;  %s233_s5 = scalar_select %p232_p11, %s543_s18, 1  ;;  %v246_v1 = vld [vmem:[%s687_s0] sm:$0xf]  ;;  %vm250_vm0 = vcmask 64512   ;;  %vm275_vm1 = vcmask 130048  }
  0x15   : > { %293 = vmatpush.msra.mxu1 %v248_v0  ;;  %v247_v3 = vld [vmem:[%s688_s1] sm:$0xff]  ;;  %vm299_vm2 = vcmask 257024   ;;  %s302_s18 = scalar_lea.sflag [#allocation3], %s229_s14 }
  0x16   : > { %s410_s6 = sshll.u32 %s233_s5, 3  ;;  %s411_s21 = sshll.u32 %s233_s5, 2 }
  0x17   : > { %s238_s9 = scalar_lea.vmem %s689_s2, %s410_s6  ;;  %294 = vmatpush.msra.mxu1 %v247_v3  ;;  %s245_s30 = scalar_lea.vmem %s690_s3, %s411_s21 }
  0x18   : > { %v249_v2 = vld [vmem:[%s238_s9] sm:$0xff]  ;;  %s231_s9 = scalar_lea.vmem [#allocation2], %s409_s22  ;;  %s487_s5 = sshra.s32 %s318_s11, 4  ;;  %s488_s5 = int_to_ptr.hbm [resolvable:$true] %s487_s5 }
  0x19   : > { %269 = vmatpush.msra.mxu0 %v249_v2  ;;  %v274_v5 = vld [vmem:[%s245_s30] sm:$0xf]  ;;  %s315_s10 = sshll.u32 %s231_s9, 4  ;;  %s489_s12 = scalar_lea.hbm %s488_s5, 4  ;;  %s316_s10 = int_to_ptr.vmem [resolvable:$true] %s315_s10 }
  0x1a   : > { %412 = vmatmul.msk.f32.vlgmr.msra.gmra.mxu0 %vm250_vm0, %v246_v1  ;;  %p490_p12 = scmp.ne.s32.totalorder %s488_s5, %s489_s12  ;;  %s493_s22 = scalar_lea.hbm %s691_s4, 8 }
  0x1b   : > { %p494_p1 = scmp.lt.s32.totalorder %s488_s5, %s691_s4  ;;  %p495_p2 = scmp.lt.s32.totalorder %s493_s22, %s489_s12 }
  0x1c   : > { %p491_p13 = pnand %p490_p12, %p618_p4 }
  0x1d   : > { %p496_p3 = por %p495_p2, %p494_p1 }
  0x1e   : > { %p492_p0 = pneg %p491_p13 }
  0x20   : > { %p497_p5 = pnand %p496_p3, %p492_p0 }
  0x97   : > { %v271_v4 = vpop.f32.mrf.mxu0 }
  0x98   : > { %413 = vmatmul.msk.f32.vlgmr.msra.gmra.mxu1 %vm275_vm1, %v271_v4 }
 0x115   : > { %v296_v6 = vpop.f32.mrf.mxu1 }
 0x116   : > { %v297_v7 = vadd.f32 %v296_v6, %v274_v5 }
 0x118   : > { %300 = vst.msk [vmem:[%s231_s9] sm:$0xf] %vm299_vm2, %v297_v7 }
 0x119   : > { %500 = shalt.err (!%p497_p5)
}
 0x11a   : > { %418 = dma.vmem_to_hbm [thread:$0]  (%p618_p4), %s316_s10, 64, %s318_s11, %s302_s18  }
 0x11b PF: > { %p424_p6 = scmp.ge.s32.totalorder %s551_s20, 2  ;;  %s329_s14 = sand.u32 1, %s531_s15  }
 0x11c   : > { %s330_s29 = scalar_lea.sflag [#allocation3], %s329_s14 }
 0x11d   : > { %p421_p7 = pnand %p424_p6, %p625_p8 }
 0x11f   : > { %p422_p9 = pneg %p421_p7 }
 0x121   : > { %526 = dma.done.wait (%p422_p9), %s330_s29, 64  }
 0x122   : > { %528 = vsyncadd (%p422_p9), %s330_s29, 4294967232  ;;  %s17_s20 = sadd.s32 1, %s551_s20   ;;  %s694_s15 = smov %s535_s16 }
 0x123   : > { %p14_p10 = scmp.ge.s32.totalorder %s17_s20, 4   ;;  %s695_s16 = smov %s539_s17 }
 0x124   : > { %s696_s17 = smov %s631_s28  ;;  %s697_s18 = smov %s547_s19 }
 0x125   : > { %s698_s19 = smov %s700_s23  ;;  %16 = sbr.rel (!%p14_p10) target bundleno = 4 (0x4), region = 74 }
 0x12a   :  { %336 = vsyncpa [#allocation3], 1 }
 0x12b   :  { %338 = vsyncpa [#allocation3 + $0x1], 1 }

</bundles_post_ra>
